<compile_context>
chip_gen: v6e
topology: v6e:2x2x1
jax: 0.10.0
libtpu: 0.0.40
codegen_flags: <defaults>
</compile_context>

<pallas_src>
import functools

import jax
import jax.numpy as jnp
from jax import lax
from jax.experimental import pallas as pl
from jax.experimental.pallas import tpu as pltpu

_EPS = 1e-6                 # torch.nn.PairwiseDistance default eps (added to the difference)
_OUT_SUB, _OUT_LANE = 8, 128
_INV_OUT_TILE = 1.0 / float(_OUT_SUB * _OUT_LANE)


def _triplet_loss_kernel(true_b, tile_rows, margin_ref, a_ref, p_ref, n_ref, o_ref):
    a = a_ref[...].astype(jnp.float32)
    p = p_ref[...].astype(jnp.float32)
    n = n_ref[...].astype(jnp.float32)
    margin = margin_ref[0, 0]

    # PyTorch PairwiseDistance: ||x1 - x2 + eps||_2 along the last dim.
    d_ap = jnp.sqrt(jnp.sum((a - p + _EPS) ** 2, axis=-1, keepdims=True))  # (TB, 1)
    d_an = jnp.sqrt(jnp.sum((a - n + _EPS) ** 2, axis=-1, keepdims=True))  # (TB, 1)

    hinge = jnp.maximum(d_ap - d_an + margin, 0.0)                         # (TB, 1)

    # Mask rows beyond the true batch size (padded rows of a partial last tile).
    rows = pl.program_id(0) * tile_rows + lax.broadcasted_iota(
        jnp.int32, (tile_rows, 1), 0)
    hinge = jnp.where(rows < true_b, hinge, 0.0)

    tile_sum = jnp.sum(hinge)  # scalar partial hinge-sum for this tile

    # Lane-dense output tile: broadcast tile_sum/1024 so the host-side jnp.sum
    # over all output elements recovers the total hinge sum exactly.
    o_ref[...] = jnp.broadcast_to(tile_sum * _INV_OUT_TILE, (_OUT_SUB, _OUT_LANE))


def _choose_tile_rows(B, D, itemsize, budget_bytes=12 * 1024 * 1024):
    # 3 inputs x 2 pipeline buffers per row of the tile.
    per_row = 3 * 2 * D * itemsize
    tb = max(8, (budget_bytes // per_row) // 8 * 8)
    if tb >= B:
        # Single block covering the full batch (full-extent block dims are always legal).
        return int(B)
    return int(tb)


def triplet_loss(anchor, positive, negative, margin, size_average=True):
    # size_average accepted for API parity; reference module always takes the mean.
    B, D = anchor.shape
    tile_rows = _choose_tile_rows(B, D, jnp.dtype(anchor.dtype).itemsize)
    grid_b = pl.cdiv(B, tile_rows)

    margin_arr = jnp.asarray(margin, dtype=jnp.float32).reshape(1, 1)
    kernel = functools.partial(_triplet_loss_kernel, B, tile_rows)

    partials = pl.pallas_call(
        kernel,
        out_shape=jax.ShapeDtypeStruct((grid_b * _OUT_SUB, _OUT_LANE), jnp.float32),
        grid_spec=pltpu.PrefetchScalarGridSpec(
            num_scalar_prefetch=0,
            grid=(grid_b,),
            in_specs=[
                # margin scalar lives in SMEM for the whole grid (no re-trace per value).
                pl.BlockSpec(memory_space=pltpu.MemorySpace.SMEM),
                pl.BlockSpec((tile_rows, D), lambda i: (i, 0)),
                pl.BlockSpec((tile_rows, D), lambda i: (i, 0)),
                pl.BlockSpec((tile_rows, D), lambda i: (i, 0)),
            ],
            out_specs=pl.BlockSpec((_OUT_SUB, _OUT_LANE), lambda i: (i, 0)),
        ),
        compiler_params=pltpu.CompilerParams(
            dimension_semantics=("parallel",),      # shards tiles across v7x's 2 TCs
            vmem_limit_bytes=32 * 1024 * 1024,
        ),
    )(margin_arr, anchor, positive, negative)

    # Finish the mean in JAX (each output tile sums to its tile's hinge sum).
    return jnp.sum(partials) / B


if __name__ == "__main__":
    key = jax.random.PRNGKey(0)
    k1, k2, k3 = jax.random.split(key, 3)

    B, D = 8, 32
    margin = 0.5

    anchor = jax.random.normal(k1, (B, D), dtype=jnp.float32)
    positive = jax.random.normal(k2, (B, D), dtype=jnp.float32)
    negative = jax.random.normal(k3, (B, D), dtype=jnp.float32)

    loss = triplet_loss(anchor, positive, negative, margin)
    jax.block_until_ready(loss)

    # Pure-JAX reference (same math as torch.nn.PairwiseDistance + hinge + mean).
    d_ap = jnp.sqrt(jnp.sum((anchor - positive + _EPS) ** 2, axis=-1))
    d_an = jnp.sqrt(jnp.sum((anchor - negative + _EPS) ** 2, axis=-1))
    ref = jnp.mean(jnp.maximum(d_ap - d_an + margin, 0.0))
    assert jnp.allclose(loss, ref, rtol=1e-5, atol=1e-5), (loss, ref)

    print("KERNEL_OK")
</pallas_src>

<mosaic_0001>
module attributes {stable_mosaic.version = 11 : i64} {
  func.func @_triplet_loss_kernel(%arg0: i32, %arg1: memref<1x1xf32, #tpu.memory_space<smem>>, %arg2: memref<8x32xf32, #tpu.memory_space<vmem>>, %arg3: memref<8x32xf32, #tpu.memory_space<vmem>>, %arg4: memref<8x32xf32, #tpu.memory_space<vmem>>, %arg5: memref<8x128xf32, #tpu.memory_space<vmem>>) attributes {dimension_semantics = [#tpu.dimension_semantics<parallel>], iteration_bounds = array<i64: 1>, scalar_prefetch = 0 : i64, scratch_operands = 0 : i64, tpu.core_type = #tpu.core_type<tc>, window_params = [{transform_indices = @transform_0, window_bounds = array<i64: 1, 1>}, {transform_indices = @transform_1, window_bounds = array<i64: 8, 32>}, {transform_indices = @transform_2, window_bounds = array<i64: 8, 32>}, {transform_indices = @transform_3, window_bounds = array<i64: 8, 32>}, {transform_indices = @transform_4, window_bounds = array<i64: 8, 128>}]} {
    %c0 = arith.constant 0 : index
    %c0_0 = arith.constant 0 : index
    %0 = vector.load %arg2[%c0, %c0_0] : memref<8x32xf32, #tpu.memory_space<vmem>>, vector<8x32xf32>
    %c0_1 = arith.constant 0 : index
    %c0_2 = arith.constant 0 : index
    %1 = vector.load %arg3[%c0_1, %c0_2] : memref<8x32xf32, #tpu.memory_space<vmem>>, vector<8x32xf32>
    %c0_3 = arith.constant 0 : index
    %c0_4 = arith.constant 0 : index
    %2 = vector.load %arg4[%c0_3, %c0_4] : memref<8x32xf32, #tpu.memory_space<vmem>>, vector<8x32xf32>
    %c0_5 = arith.constant 0 : index
    %c0_6 = arith.constant 0 : index
    %3 = memref.load %arg1[%c0_5, %c0_6] : memref<1x1xf32, #tpu.memory_space<smem>>
    %4 = arith.subf %0, %1 : vector<8x32xf32>
    %cst = arith.constant 9.99999997E-7 : f32
    %5 = vector.broadcast %cst : f32 to vector<8x32xf32>
    %6 = arith.addf %4, %5 : vector<8x32xf32>
    %7 = arith.mulf %6, %6 : vector<8x32xf32>
    %cst_7 = arith.constant dense<0.000000e+00> : vector<8xf32>
    %8 = vector.multi_reduction <add>, %7, %cst_7 [1] : vector<8x32xf32> to vector<8xf32>
    %9 = vector.shape_cast %8 : vector<8xf32> to vector<8x1xf32>
    %10 = math.sqrt %9 : vector<8x1xf32>
    %11 = arith.subf %0, %2 : vector<8x32xf32>
    %cst_8 = arith.constant 9.99999997E-7 : f32
    %12 = vector.broadcast %cst_8 : f32 to vector<8x32xf32>
    %13 = arith.addf %11, %12 : vector<8x32xf32>
    %14 = arith.mulf %13, %13 : vector<8x32xf32>
    %cst_9 = arith.constant dense<0.000000e+00> : vector<8xf32>
    %15 = vector.multi_reduction <add>, %14, %cst_9 [1] : vector<8x32xf32> to vector<8xf32>
    %16 = vector.shape_cast %15 : vector<8xf32> to vector<8x1xf32>
    %17 = math.sqrt %16 : vector<8x1xf32>
    %18 = arith.subf %10, %17 : vector<8x1xf32>
    %19 = vector.broadcast %3 : f32 to vector<8x1xf32>
    %20 = arith.addf %18, %19 : vector<8x1xf32>
    %cst_10 = arith.constant 0.000000e+00 : f32
    %21 = vector.broadcast %cst_10 : f32 to vector<8x1xf32>
    %22 = arith.maximumf %20, %21 : vector<8x1xf32>
    %c8_i32 = arith.constant 8 : i32
    %23 = arith.muli %arg0, %c8_i32 : i32
    %24 = tpu.iota {dimensions = array<i32: 0>} : vector<8x1xi32>
    %25 = vector.broadcast %23 : i32 to vector<8x1xi32>
    %26 = arith.addi %25, %24 : vector<8x1xi32>
    %c8_i32_11 = arith.constant 8 : i32
    %27 = vector.broadcast %c8_i32_11 : i32 to vector<8x1xi32>
    %28 = arith.cmpi slt, %26, %27 : vector<8x1xi32>
    %cst_12 = arith.constant 0.000000e+00 : f32
    %29 = vector.broadcast %cst_12 : f32 to vector<8x1xf32>
    %30 = arith.select %28, %22, %29 : vector<8x1xi1>, vector<8x1xf32>
    %31 = vector.shape_cast %30 : vector<8x1xf32> to vector<1x8x1xf32>
    %cst_13 = arith.constant dense<0.000000e+00> : vector<1xf32>
    %32 = vector.multi_reduction <add>, %31, %cst_13 [1, 2] : vector<1x8x1xf32> to vector<1xf32>
    %33 = vector.shape_cast %32 : vector<1xf32> to vector<1x1x1xf32>
    %34 = vector.extract %33[0, 0, 0] : f32 from vector<1x1x1xf32>
    %cst_14 = arith.constant 9.765625E-4 : f32
    %35 = arith.mulf %34, %cst_14 : f32
    %36 = vector.broadcast %35 : f32 to vector<8x128xf32>
    %c0_15 = arith.constant 0 : index
    %c0_16 = arith.constant 0 : index
    %37 = vector.load %arg5[%c0_15, %c0_16] : memref<8x128xf32, #tpu.memory_space<vmem>>, vector<8x128xf32>
    tpu.vector_store %arg5[%c0_15, %c0_16], %36 {strides = array<i32>} : memref<8x128xf32, #tpu.memory_space<vmem>>, vector<8x128xf32>,
    return
  }
  func.func @transform_0(%arg0: i32) -> (i32, i32) {
    %c0_i32 = arith.constant 0 : i32
    %c0_i32_0 = arith.constant 0 : i32
    %c0_i32_1 = arith.constant 0 : i32
    return %c0_i32, %c0_i32_0 : i32, i32
  }
  func.func @transform_1(%arg0: i32) -> (i32, i32) {
    %c0_i32 = arith.constant 0 : i32
    %c0_i32_0 = arith.constant 0 : i32
    return %arg0, %c0_i32 : i32, i32
  }
  func.func @transform_2(%arg0: i32) -> (i32, i32) {
    %c0_i32 = arith.constant 0 : i32
    %c0_i32_0 = arith.constant 0 : i32
    return %arg0, %c0_i32 : i32, i32
  }
  func.func @transform_3(%arg0: i32) -> (i32, i32) {
    %c0_i32 = arith.constant 0 : i32
    %c0_i32_0 = arith.constant 0 : i32
    return %arg0, %c0_i32 : i32, i32
  }
  func.func @transform_4(%arg0: i32) -> (i32, i32) {
    %c0_i32 = arith.constant 0 : i32
    %c0_i32_0 = arith.constant 0 : i32
    return %arg0, %c0_i32 : i32, i32
  }
}

</mosaic_0001>

<bundles_post_ra>
// kernel: tpu_custom_call.1
= control target key start
LH: loop header
LB: loop body
LE: loop exit
PB: predicated region body
PF: predicated region fallthrough
CT: control target
= control target key end

     0   :  { %10 = vsyncpa [#allocation4], 0  ;;  %s266_s0 = inlined_call_operand.<no memory space> [shape: f32[1,1], index: 0, kind: input, shape index: {}]   ;;  %s267_s1 = inlined_call_operand.hbm [shape: f32[8,32], index: 1, kind: input, shape index: {}]   ;;  %s268_s2 = inlined_call_operand.hbm [shape: f32[8,32], index: 2, kind: input, shape index: {}]   ;;  %s269_s3 = inlined_call_operand.hbm [shape: f32[8,32], index: 3, kind: input, shape index: {}]   ;;  %s270_s4 = inlined_call_operand.hbm [shape: f32[8,128], index: 4, kind: output, shape index: {}]  }
   0x1   :  { %11 = vsyncpa [#allocation7], 0 }
   0x2   :  { %12 = vsyncpa [#allocation5], 0  ;;  %s222_s15 = smov [#allocation6]   ;;  %s223_s17 = smov [#allocation3]  }
   0x3   :  { %s31_s16 = sshll.u32 %s222_s15, 4  ;;  %s21_s18 = sshll.u32 %s223_s17, 4  ;;  %s32_s16 = int_to_ptr.vmem [resolvable:$true] %s31_s16  ;;  %s22_s18 = int_to_ptr.vmem [resolvable:$true] %s21_s18 }
   0x4   :  { %s144_s19 = scalar_lea.vmem %s32_s16, 128  ;;  %p149_p1 = scmp.lt.s32.totalorder %s32_s16, %s32_s16 }
   0x5   :  { %p145_p0 = scmp.ne.s32.totalorder %s32_s16, %s144_s19  ;;  %p150_p2 = scmp.lt.s32.totalorder %s144_s19, %s144_s19 }
   0x7   :  { %p151_p3 = por %p150_p2, %p149_p1 }
   0x9   :  { %p152_p4 = pnand %p151_p3, %p145_p0 }
   0xb   :  { %155 = shalt.err (!%p152_p4)
}
   0xc   :  { %34 = dma.hbm_to_vmem [thread:$0]  %s268_s2, 128, %s32_s16, [#allocation7]  }
   0xd   :  { %s164_s22 = scalar_lea.vmem %s22_s18, 128  ;;  %p169_p6 = scmp.lt.s32.totalorder %s22_s18, %s22_s18 }
   0xe   :  { %p165_p5 = scmp.ne.s32.totalorder %s22_s18, %s164_s22  ;;  %p170_p7 = scmp.lt.s32.totalorder %s164_s22, %s164_s22 }
  0x10   :  { %p171_p8 = por %p170_p7, %p169_p6 }
  0x12   :  { %p172_p9 = pnand %p171_p8, %p165_p5 }
  0x14   :  { %175 = shalt.err (!%p172_p9)
}
  0x15   :  { %24 = dma.hbm_to_vmem [thread:$0]  %s267_s1, 128, %s22_s18, [#allocation4]  }
  0x16   :  { %s224_s25 = smov [#allocation8]  }
  0x17   :  { %s41_s26 = sshll.u32 %s224_s25, 4  ;;  %s42_s26 = int_to_ptr.vmem [resolvable:$true] %s41_s26 }
  0x18   :  { %s184_s27 = scalar_lea.vmem %s42_s26, 128  ;;  %p189_p11 = scmp.lt.s32.totalorder %s42_s26, %s42_s26 }
  0x19   :  { %p185_p10 = scmp.ne.s32.totalorder %s42_s26, %s184_s27  ;;  %p190_p12 = scmp.lt.s32.totalorder %s184_s27, %s184_s27 }
  0x1b   :  { %p191_p13 = por %p190_p12, %p189_p11 }
  0x1d   :  { %p192_p0 = pnand %p191_p13, %p185_p10 }
  0x1f   :  { %195 = shalt.err (!%p192_p0)
}
  0x20   :  { %44 = dma.hbm_to_vmem [thread:$0]  %s269_s3, 128, %s42_s26, [#allocation7]  }
  0x21   :  { %216 = dma.done.wait [#allocation4], 128  }
  0x22   :  { %217 = vsyncadd [#allocation4], 4294967168 }
  0x23   :  { %218 = dma.done.wait [#allocation7], 256  }
  0x24   :  { %219 = vsyncadd [#allocation7], 4294967040  ;;  %v54_v0 = vld [vmem:[#allocation3] sm:$0xff]  ;;  %v55_v1 = vld [vmem:[#allocation6] sm:$0xff]  ;;  %vm61_vm0 = vcmask 261120   ;;  %v86_v23 = vstv %s266_s0  ;;  %vm96_vm5 = vcmask 7168  }
  0x25   :  { %v56_v2 = vld [vmem:[#allocation8] sm:$0xff]  ;;  %v58_v3 = vsub.f32 %v54_v0, %v55_v1  ;;  %s225_s29 = smov [#allocation9]  }
  0x26   :  { %v72_v4 = vsub.f32 %v54_v0, %v56_v2  ;;  %s116_s30 = sshll.u32 %s225_s29, 4  ;;  %s117_s30 = int_to_ptr.vmem [resolvable:$true] %s116_s30 }
  0x27   :  { %v59_v5 = vadd.f32 1e-06, %v58_v3  ;;  %s196_s0 = scalar_lea.vmem %s117_s30, 128  ;;  %p201_p2 = scmp.lt.s32.totalorder %s117_s30, %s117_s30 }
  0x28   :  { %v73_v6 = vadd.f32 1e-06, %v72_v4  ;;  %p197_p1 = scmp.ne.s32.totalorder %s117_s30, %s196_s0  ;;  %p202_p3 = scmp.lt.s32.totalorder %s196_s0, %s196_s0 }
  0x29   :  { %v60_v7 = vmul.f32 %v59_v5, %v59_v5 }
  0x2a   :  { %v74_v8 = vmul.f32 %v73_v6, %v73_v6  ;;  %p203_p4 = por %p202_p3, %p201_p2 }
  0x2b   :  { %v62_v9 = vsel %vm61_vm0, %v60_v7, 0.0 }
  0x2c   :  { %63 = vadd.xlane.f32.xlu0 %v62_v9  ;;  %v75_v10 = vsel %vm61_vm0, %v74_v8, 0.0  ;;  %p204_p5 = pnand %p203_p4, %p197_p1 }
  0x30   :  { %76 = vadd.xlane.f32.xlu0 %v75_v10 }
  0xb5   :  { %v64_v11 = vpop.xlane.xlu0 %63 }
  0xb6   :  { %132 = vrsqrt.f32 %v64_v11  ;;  %vm67_vm1 = vcmp.eq.f32.partialorder %v64_v11, inf  ;;  %v70_v19 = vand.u32 2147483648, %v64_v11  ;;  %vm69_vm3 = vcmp.eq.f32.partialorder %v64_v11, 0.0 }
  0xb9   :  { %v77_v12 = vpop.xlane.xlu0 %76 }
  0xba   :  { %134 = vrsqrt.f32 %v77_v12  ;;  %vm80_vm2 = vcmp.eq.f32.partialorder %v77_v12, inf  ;;  %v83_v18 = vand.u32 2147483648, %v77_v12  ;;  %vm82_vm4 = vcmp.eq.f32.partialorder %v77_v12, 0.0 }
  0xc3   :  { %v133_v13 = vpop.eup %132 }
  0xc4   :  { %v66_v14 = vmul.f32 %v133_v13, %v64_v11 }
  0xc6   :  { %v68_v17 = vsel %vm67_vm1, %v64_v11, %v66_v14 }
  0xc7   :  { %v135_v15 = vpop.eup %134  ;;  %v71_v21 = vsel %vm69_vm3, %v70_v19, %v68_v17 }
  0xc8   :  { %v79_v16 = vmul.f32 %v135_v15, %v77_v12 }
  0xca   :  { %v81_v20 = vsel %vm80_vm2, %v77_v12, %v79_v16 }
  0xcb   :  { %v84_v22 = vsel %vm82_vm4, %v83_v18, %v81_v20 }
  0xcc   :  { %v85_v24 = vsub.f32 %v71_v21, %v84_v22 }
  0xce   :  { %v87_v25 = vadd.f32 %v86_v23, %v85_v24 }
  0xd0   :  { %v88_v26 = vmax.f32 %v87_v25, 0.0 }
  0xd2   :  { %v97_v27 = vsel %vm96_vm5, %v88_v26, 0.0 }
  0xd3   :  { %98 = vadd.xlane.f32.xlu1 %v97_v27 }
 0x15c   :  { %v99_v28 = vpop.xlane.xlu1 %98 }
 0x15d   :  { %v100_v29 = vrot.slane %v99_v28, 4 }
 0x15f   :  { %v101_v30 = vadd.f32 %v100_v29, %v99_v28 }
 0x161   :  { %v102_v31 = vrot.slane %v101_v30, 2 }
 0x163   :  { %v103_v32 = vadd.f32 %v102_v31, %v101_v30 }
 0x165   :  { %v104_v33 = vrot.slane %v103_v32, 1 }
 0x167   :  { %v105_v34 = vadd.f32 %v104_v33, %v103_v32 }
 0x169   :  { %126 = vpush %v105_v34 }
 0x19a   :  { %s127_s5 = spop %126 }
 0x19b   :  { %s107_s6 = smul.f32 0.0009765625, %s127_s5 }
 0x19d   :  { %v108_v35 = vstv %s107_s6 }
 0x19e   :  { %109 = vst [vmem:[#allocation9] sm:$0xff] %v108_v35 }
 0x19f   :  { %207 = shalt.err (!%p204_p5)
}
 0x1a0   :  { %119 = dma.vmem_to_hbm [thread:$0]  %s117_s30, 128, %s270_s4, [#allocation5]  }
 0x1a1   :  { %220 = dma.done.wait [#allocation5], 128  }
 0x1a2   :  { %221 = vsyncadd [#allocation5], 4294967168 }
 0x1a3   :  { %123 = vsyncpa [#allocation4], 1 }
 0x1a4   :  { %124 = vsyncpa [#allocation7], 1 }
 0x1a5   :  { %125 = vsyncpa [#allocation5], 1 }

</bundles_post_ra>
